<compile_context>
chip_gen: v5e
topology: v5e:2x2
jax: 0.10.0
libtpu: 0.0.40
codegen_flags: <defaults>
</compile_context>

<pallas_src>
import jax
import jax.numpy as jnp
import numpy as np
from jax import lax
from jax.experimental import pallas as pl
from jax.experimental.pallas import tpu as pltpu

# ---- model hyper-parameters (small, consistent with the module) -------------
D_MODEL = 32
FFN_HIDDEN = 64
N_HEAD = 4
D_HEAD = D_MODEL // N_HEAD
SEQ = 8
MEM_LEN = 8
KV_LEN = MEM_LEN + SEQ
BATCH = 2
LN_EPS = 1e-5

NKV = BATCH * KV_LEN          # 32 kv rows  ([mem_b0; mem_b1; x_b0; x_b1])
NQ = BATCH * SEQ              # 16 query rows
HC = N_HEAD * NKV             # 128 score columns (head-major, kv-row minor)

# bf16 constant-slab row offsets (all multiples of 8)
R_WATTN = 0                                   # (32,128)  [wq*scale | wk | wv | wo]
R_WFFN = R_WATTN + D_MODEL                    # (64,128)  w1 @ [:32,0:64], w2 @ [:,64:96]
R_GRP = R_WFFN + FFN_HIDDEN                   # (128,128) head-block ones
R_BD = R_GRP + HC                             # (128,32)  block-diag head mask (lanes 0:32)
WCONST_ROWS = R_BD + HC                       # 352

# f32 slab rows
R_VEC = 0                                     # (8,128)  biases + LN params
R_SBIAS = 8                                   # (16,128) additive cross-batch score bias
VCONST_ROWS = R_SBIAS + NQ                    # 24


def _layer_norm_1pass(x, gamma, beta):
    # single-pass variance: E[x^2] - mu^2 (one fewer cross-lane reduce)
    mu = jnp.mean(x, axis=-1, keepdims=True)
    var = jnp.mean(x * x, axis=-1, keepdims=True) - mu * mu
    return (x - mu) * lax.rsqrt(var + LN_EPS) * gamma + beta


# ----------------------------- Pallas kernel ---------------------------------
def longformer_xl_kernel(kv_ref, wc_ref, vc_ref, out_ref):
    f32, bf16 = jnp.float32, jnp.bfloat16
    B, M = BATCH, MEM_LEN
    D, H, F = D_MODEL, N_HEAD, FFN_HIDDEN

    kv = kv_ref[...]                               # (32, 32) f32 [mem_b0;mem_b1;x_b0;x_b1]
    vec = vc_ref[R_VEC:R_VEC + 8, :]               # (8, 128)  biases + LN params
    sbias = vc_ref[R_SBIAS:R_SBIAS + NQ, :]        # (16, 128) 0 / -1e30 cross-batch bias

    wat = wc_ref[R_WATTN:R_WATTN + D, :]           # (32, 128) [wq*scale | wk | wv | wo]
    wff = wc_ref[R_WFFN:R_WFFN + F, :]             # (64, 128)
    grp = wc_ref[R_GRP:R_GRP + HC, :]              # (128,128) head-block ones (bf16)
    bdm = wc_ref[R_BD:R_BD + HC, 0:D]              # (128, 32) block-diag head mask (0/1)

    # ---- fused QKV (+unused O columns) projection: one MXU pass -------------
    proj = jnp.dot(kv.astype(bf16), wat, preferred_element_type=f32)
    proj = proj + vec[0:1, :]                      # row0 = [bq*scale | bk | bv | 0]

    x_all = kv[B * M:, :]                          # (16, 32) residual = x rows
    q_all = proj[B * M:, 0:D]                      # (16, 32) scaled queries
    k_all = proj[:, D:2 * D]                       # (32, 32)
    v_all = proj[:, 2 * D:3 * D]                   # (32, 32)

    # ---- block-diagonal (head x kv-row) K / V --------------------------------
    # cast to bf16 BEFORE the 4x replication; apply precomputed mask via select
    bd_sel = bdm > 0
    k_bd = jnp.where(bd_sel, jnp.concatenate([k_all.astype(bf16)] * H, axis=0),
                     jnp.zeros((HC, D), bf16))     # (128, 32)
    v_bd = jnp.where(bd_sel, jnp.concatenate([v_all.astype(bf16)] * H, axis=0),
                     jnp.zeros((HC, D), bf16))     # (128, 32)

    # scores: per-head Q.K^T (scale already folded into wq/bq), column j = h*32 + r
    # TODO(synk): src_mask defaults to None and LocalXLAttention source is not
    # available; full attention over [mem; x] is used (no sliding-window mask).
    s = lax.dot_general(q_all.astype(bf16), k_bd,
                        dimension_numbers=(((1,), (1,)), ((), ())),
                        preferred_element_type=f32)                    # (16, 128)
    s = s + sbias                                  # cross-batch columns -> -1e30

    # ---- softmax per (head, batch) group, all f32 elementwise ----------------
    # masked columns exp to exactly 0, so the head-block sum equals the valid
    # same-batch sum and no post-hoc select is needed.
    row_max = jnp.max(s, axis=-1, keepdims=True)
    e = jnp.exp(s - row_max)
    denom = jnp.dot(e.astype(bf16), grp, preferred_element_type=f32)   # head-block sums
    p = e * pl.reciprocal(denom, approx=True)

    # P @ V_blockdiag: head outputs come out already concatenated along D
    attn = jnp.dot(p.astype(bf16), v_bd, preferred_element_type=f32)   # (16, 32)
    attn = jnp.dot(attn.astype(bf16), wat[:, 3 * D:4 * D],
                   preferred_element_type=f32) + vec[1:2, 0:D]

    # ---- residual + LayerNorm1 (dropout1 = identity in eval) ----------------
    h1 = _layer_norm_1pass(attn + x_all, vec[2:3, 0:D], vec[3:4, 0:D])

    # ---- FeedForward: Linear -> GELU -> Linear -------------------------------
    ff = jnp.dot(h1.astype(bf16), wff[0:D, 0:F],
                 preferred_element_type=f32) + vec[4:5, 0:F]
    # TODO(synk): PyTorch nn.GELU defaults to exact erf; tanh approximation used here.
    ff = jax.nn.gelu(ff, approximate=True)
    ff = jnp.dot(ff.astype(bf16), wff[:, F:F + D],
                 preferred_element_type=f32) + vec[5:6, 0:D]

    # ---- residual + LayerNorm2 (dropout2 = identity in eval) ----------------
    out = _layer_norm_1pass(ff + h1, vec[6:7, 0:D], vec[7:8, 0:D])
    out_ref[...] = out.astype(out_ref.dtype)


# ----------------------- one-time parameter preparation -----------------------
def prepare_params(params):
    """Pack weights, biases and all constant masks into 2 slabs. Called once."""
    D, F, H = D_MODEL, FFN_HIDDEN, N_HEAD
    scale = 1.0 / (D_HEAD ** 0.5)

    # ---- bf16 slab: weights + precomputed masks, lane-dense (352, 128) ------
    wc = np.zeros((WCONST_ROWS, 128), np.float32)
    wc[R_WATTN:R_WATTN + D, :] = np.concatenate(
        [np.asarray(params["wq"]) * scale, np.asarray(params["wk"]),
         np.asarray(params["wv"]), np.asarray(params["wo"])], axis=1)
    wc[R_WFFN:R_WFFN + D, 0:F] = np.asarray(params["w_ff1"])         # w1 (32,64)
    wc[R_WFFN:R_WFFN + F, F:F + D] = np.asarray(params["w_ff2"])     # w2 (64,32)

    col = np.arange(HC)
    d_idx = np.arange(D)
    # head-block ones: grp[i, j] = [i//NKV == j//NKV]
    wc[R_GRP:R_GRP + HC, :] = (col[:, None] // NKV == col[None, :] // NKV)
    # block-diag head mask: bdm[h*NKV + r, d] = [h == d//D_HEAD]
    wc[R_BD:R_BD + HC, 0:D] = (col[:, None] // NKV == d_idx[None, :] // D_HEAD)
    wconst = jnp.asarray(wc, dtype=jnp.bfloat16)

    # ---- f32 slab: biases + LN params + additive cross-batch score bias -----
    vc = np.zeros((VCONST_ROWS, 128), np.float32)
    vc[0, 0:D] = np.asarray(params["bq"])[0] * scale
    vc[0, D:2 * D] = np.asarray(params["bk"])[0]
    vc[0, 2 * D:3 * D] = np.asarray(params["bv"])[0]
    vc[1, 0:D] = np.asarray(params["bo"])[0]
    vc[2, 0:D] = np.asarray(params["ln1_g"])[0]
    vc[3, 0:D] = np.asarray(params["ln1_b"])[0]
    vc[4, 0:F] = np.asarray(params["b_ff1"])[0]
    vc[5, 0:D] = np.asarray(params["b_ff2"])[0]
    vc[6, 0:D] = np.asarray(params["ln2_g"])[0]
    vc[7, 0:D] = np.asarray(params["ln2_b"])[0]
    # cross-batch additive bias: kv slab is [mem_b0; mem_b1; x_b0; x_b1]
    kv_row = col % NKV
    key_batch = np.where(kv_row < BATCH * MEM_LEN, kv_row // MEM_LEN,
                         (kv_row - BATCH * MEM_LEN) // SEQ)
    q_batch = np.arange(NQ) // SEQ
    vc[R_SBIAS:R_SBIAS + NQ, :] = np.where(
        q_batch[:, None] == key_batch[None, :], 0.0, -1e30)
    vconst = jnp.asarray(vc, dtype=jnp.float32)

    return {"wconst": wconst, "vconst": vconst}


# ------------------------------- per-call wrapper ------------------------------
@jax.jit
def longformer_xl_layer(x, mem, prepped):
    B, S, D = x.shape
    M = mem.shape[1]
    # only per-call work: [mem_b0; mem_b1; x_b0; x_b1] activation slab
    kv = jnp.concatenate([mem.reshape(B * M, D), x.reshape(B * S, D)],
                         axis=0).astype(jnp.float32)

    cost = pl.CostEstimate(flops=1_210_000, transcendentals=5_200,
                           bytes_accessed=109_000)
    out_flat = pl.pallas_call(
        longformer_xl_kernel,
        out_shape=jax.ShapeDtypeStruct((B * S, D), x.dtype),
        # no grid: single invocation, whole arrays resident in VMEM,
        # no dead double-buffers / pipelining bookkeeping.
        in_specs=[
            pl.BlockSpec(memory_space=pltpu.MemorySpace.VMEM),
            pl.BlockSpec(memory_space=pltpu.MemorySpace.VMEM),
            pl.BlockSpec(memory_space=pltpu.MemorySpace.VMEM),
        ],
        out_specs=pl.BlockSpec(memory_space=pltpu.MemorySpace.VMEM),
        cost_estimate=cost,
    )(kv, prepped["wconst"], prepped["vconst"])
    return out_flat.reshape(B, S, D)


# ----------------------- pure-JAX reference (for checking) --------------------
def _ref_layer_norm(x, gamma, beta):
    mu = jnp.mean(x, axis=-1, keepdims=True)
    var = jnp.mean((x - mu) ** 2, axis=-1, keepdims=True)
    return (x - mu) * lax.rsqrt(var + LN_EPS) * gamma + beta


def reference(x, mem, p):
    kv = jnp.concatenate([mem, x], axis=1)                       # (B, M+S, D)
    q = x @ p["wq"] + p["bq"]
    k = kv @ p["wk"] + p["bk"]
    v = kv @ p["wv"] + p["bv"]
    B, S, D = x.shape
    L = kv.shape[1]
    qh = q.reshape(B, S, N_HEAD, D_HEAD).transpose(0, 2, 1, 3)
    kh = k.reshape(B, L, N_HEAD, D_HEAD).transpose(0, 2, 1, 3)
    vh = v.reshape(B, L, N_HEAD, D_HEAD).transpose(0, 2, 1, 3)
    s = jnp.einsum("bhqd,bhkd->bhqk", qh, kh) / (D_HEAD ** 0.5)
    pr = jax.nn.softmax(s, axis=-1)
    o = jnp.einsum("bhqk,bhkd->bhqd", pr, vh).transpose(0, 2, 1, 3).reshape(B, S, D)
    attn = o @ p["wo"] + p["bo"]
    h1 = _ref_layer_norm(attn + x, p["ln1_g"], p["ln1_b"])
    ff = jax.nn.gelu(h1 @ p["w_ff1"] + p["b_ff1"], approximate=True) @ p["w_ff2"] + p["b_ff2"]
    return _ref_layer_norm(ff + h1, p["ln2_g"], p["ln2_b"])


def init_params(key):
    ks = jax.random.split(key, 8)
    s = 0.05
    f32 = jnp.float32
    return {
        "wq": s * jax.random.normal(ks[0], (D_MODEL, D_MODEL), f32),
        "bq": jnp.zeros((1, D_MODEL), f32),
        "wk": s * jax.random.normal(ks[1], (D_MODEL, D_MODEL), f32),
        "bk": jnp.zeros((1, D_MODEL), f32),
        "wv": s * jax.random.normal(ks[2], (D_MODEL, D_MODEL), f32),
        "bv": jnp.zeros((1, D_MODEL), f32),
        "wo": s * jax.random.normal(ks[3], (D_MODEL, D_MODEL), f32),
        "bo": s * jax.random.normal(ks[4], (1, D_MODEL), f32),
        "ln1_g": jnp.ones((1, D_MODEL), f32),
        "ln1_b": jnp.zeros((1, D_MODEL), f32),
        "w_ff1": s * jax.random.normal(ks[5], (D_MODEL, FFN_HIDDEN), f32),
        "b_ff1": s * jax.random.normal(ks[6], (1, FFN_HIDDEN), f32),
        "w_ff2": s * jax.random.normal(ks[7], (FFN_HIDDEN, D_MODEL), f32),
        "b_ff2": jnp.zeros((1, D_MODEL), f32),
        "ln2_g": jnp.ones((1, D_MODEL), f32),
        "ln2_b": jnp.zeros((1, D_MODEL), f32),
    }


if __name__ == "__main__":
    key = jax.random.PRNGKey(0)
    kx, km, kp = jax.random.split(key, 3)
    x = jax.random.normal(kx, (BATCH, SEQ, D_MODEL), jnp.float32)
    mem = jax.random.normal(km, (BATCH, MEM_LEN, D_MODEL), jnp.float32)
    params = init_params(kp)

    prepped = prepare_params(params)            # one-time packing (weights + masks)
    out = longformer_xl_layer(x, mem, prepped)  # per-call: kv concat + kernel only
    out = jax.block_until_ready(out)

    ref = reference(x, mem, params)
    assert out.shape == (BATCH, SEQ, D_MODEL)
    max_err = float(jnp.max(jnp.abs(out - ref)))
    if not bool(jnp.all(jnp.isfinite(out))) or max_err > 5e-2:
        raise SystemExit(f"kernel/reference mismatch: max_err={max_err}")
    print("KERNEL_OK")
</pallas_src>

<mosaic_0001>
module attributes {stable_mosaic.version = 11 : i64} {
  func.func @longformer_xl_kernel(%arg0: memref<32x32xf32, #tpu.memory_space<vmem>>, %arg1: memref<352x128xbf16, #tpu.memory_space<vmem>>, %arg2: memref<24x128xf32, #tpu.memory_space<vmem>>, %arg3: memref<16x32xf32, #tpu.memory_space<vmem>>) attributes {dimension_semantics = [], scalar_prefetch = 0 : i64, scratch_operands = 0 : i64, tpu.core_type = #tpu.core_type<tc>} {
    %c0 = arith.constant 0 : index
    %c0_0 = arith.constant 0 : index
    %0 = vector.load %arg0[%c0, %c0_0] : memref<32x32xf32, #tpu.memory_space<vmem>>, vector<32x32xf32>
    %c0_1 = arith.constant 0 : index
    %c0_2 = arith.constant 0 : index
    %1 = vector.load %arg2[%c0_1, %c0_2] : memref<24x128xf32, #tpu.memory_space<vmem>>, vector<8x128xf32>
    %c8 = arith.constant 8 : index
    %c0_3 = arith.constant 0 : index
    %2 = vector.load %arg2[%c8, %c0_3] : memref<24x128xf32, #tpu.memory_space<vmem>>, vector<16x128xf32>
    %c0_4 = arith.constant 0 : index
    %c0_5 = arith.constant 0 : index
    %3 = vector.load %arg1[%c0_4, %c0_5] : memref<352x128xbf16, #tpu.memory_space<vmem>>, vector<32x128xbf16>
    %c32 = arith.constant 32 : index
    %c0_6 = arith.constant 0 : index
    %4 = vector.load %arg1[%c32, %c0_6] : memref<352x128xbf16, #tpu.memory_space<vmem>>, vector<64x128xbf16>
    %c96 = arith.constant 96 : index
    %c0_7 = arith.constant 0 : index
    %5 = vector.load %arg1[%c96, %c0_7] : memref<352x128xbf16, #tpu.memory_space<vmem>>, vector<128x128xbf16>
    %c224 = arith.constant 224 : index
    %c0_8 = arith.constant 0 : index
    %6 = vector.load %arg1[%c224, %c0_8] : memref<352x128xbf16, #tpu.memory_space<vmem>>, vector<128x32xbf16>
    %7 = arith.truncf %0 : vector<32x32xf32> to vector<32x32xbf16>
    %cst = arith.constant dense<0.000000e+00> : vector<32x128xf32>
    %8 = tpu.matmul %7, %3, %cst {dimension_numbers = #tpu.dot_dimension_numbers<[1], [0], [0], [1], [0, 0, 1, 1], [], []>} : vector<32x32xbf16>, vector<32x128xbf16>, vector<32x128xf32> -> vector<32x128xf32>
    %9 = vector.extract_strided_slice %1 {offsets = [0, 0], sizes = [1, 128], strides = [1, 1]} : vector<8x128xf32> to vector<1x128xf32>
    %10 = vector.broadcast %9 : vector<1x128xf32> to vector<32x128xf32>
    %11 = arith.addf %8, %10 : vector<32x128xf32>
    %12 = vector.extract_strided_slice %0 {offsets = [16, 0], sizes = [16, 32], strides = [1, 1]} : vector<32x32xf32> to vector<16x32xf32>
    %13 = vector.extract_strided_slice %11 {offsets = [16, 0], sizes = [16, 32], strides = [1, 1]} : vector<32x128xf32> to vector<16x32xf32>
    %14 = vector.extract_strided_slice %11 {offsets = [0, 32], sizes = [32, 32], strides = [1, 1]} : vector<32x128xf32> to vector<32x32xf32>
    %15 = vector.extract_strided_slice %11 {offsets = [0, 64], sizes = [32, 32], strides = [1, 1]} : vector<32x128xf32> to vector<32x32xf32>
    %cst_9 = arith.constant 0.000000e+00 : bf16
    %16 = vector.broadcast %cst_9 : bf16 to vector<128x32xbf16>
    %17 = arith.cmpf ogt, %6, %16 : vector<128x32xbf16>
    %18 = arith.truncf %14 : vector<32x32xf32> to vector<32x32xbf16>
    %19 = tpu.concatenate %18, %18, %18, %18 in 0 : vector<32x32xbf16>, vector<32x32xbf16>, vector<32x32xbf16>, vector<32x32xbf16> -> vector<128x32xbf16>
    %cst_10 = arith.constant 0.000000e+00 : bf16
    %20 = vector.broadcast %cst_10 : bf16 to vector<128x32xbf16>
    %21 = arith.select %17, %19, %20 : vector<128x32xi1>, vector<128x32xbf16>
    %22 = arith.truncf %15 : vector<32x32xf32> to vector<32x32xbf16>
    %23 = tpu.concatenate %22, %22, %22, %22 in 0 : vector<32x32xbf16>, vector<32x32xbf16>, vector<32x32xbf16>, vector<32x32xbf16> -> vector<128x32xbf16>
    %cst_11 = arith.constant 0.000000e+00 : bf16
    %24 = vector.broadcast %cst_11 : bf16 to vector<128x32xbf16>
    %25 = arith.select %17, %23, %24 : vector<128x32xi1>, vector<128x32xbf16>
    %26 = arith.truncf %13 : vector<16x32xf32> to vector<16x32xbf16>
    %cst_12 = arith.constant dense<0.000000e+00> : vector<16x128xf32>
    %27 = tpu.matmul %26, %21, %cst_12 {dimension_numbers = #tpu.dot_dimension_numbers<[1], [1], [0], [0], [0, 0, 1, 0], [], []>} : vector<16x32xbf16>, vector<128x32xbf16>, vector<16x128xf32> -> vector<16x128xf32>
    %28 = arith.addf %27, %2 : vector<16x128xf32>
    %cst_13 = arith.constant dense<0xFF800000> : vector<16xf32>
    %29 = vector.multi_reduction <maximumf>, %28, %cst_13 [1] : vector<16x128xf32> to vector<16xf32>
    %30 = vector.shape_cast %29 : vector<16xf32> to vector<16x1xf32>
    %31 = vector.broadcast %30 : vector<16x1xf32> to vector<16x128xf32>
    %32 = arith.subf %28, %31 : vector<16x128xf32>
    %33 = math.exp %32 : vector<16x128xf32>
    %34 = arith.truncf %33 : vector<16x128xf32> to vector<16x128xbf16>
    %cst_14 = arith.constant dense<0.000000e+00> : vector<16x128xf32>
    %35 = tpu.matmul %34, %5, %cst_14 {dimension_numbers = #tpu.dot_dimension_numbers<[1], [0], [0], [1], [0, 0, 1, 1], [], []>} : vector<16x128xbf16>, vector<128x128xbf16>, vector<16x128xf32> -> vector<16x128xf32>
    %36 = tpu.reciprocal %35 {approx = true} : vector<16x128xf32> -> vector<16x128xf32>
    %37 = arith.mulf %33, %36 : vector<16x128xf32>
    %38 = arith.truncf %37 : vector<16x128xf32> to vector<16x128xbf16>
    %cst_15 = arith.constant dense<0.000000e+00> : vector<16x32xf32>
    %39 = tpu.matmul %38, %25, %cst_15 {dimension_numbers = #tpu.dot_dimension_numbers<[1], [0], [0], [1], [0, 0, 1, 1], [], []>} : vector<16x128xbf16>, vector<128x32xbf16>, vector<16x32xf32> -> vector<16x32xf32>
    %40 = arith.truncf %39 : vector<16x32xf32> to vector<16x32xbf16>
    %41 = vector.extract_strided_slice %3 {offsets = [0, 96], sizes = [32, 32], strides = [1, 1]} : vector<32x128xbf16> to vector<32x32xbf16>
    %cst_16 = arith.constant dense<0.000000e+00> : vector<16x32xf32>
    %42 = tpu.matmul %40, %41, %cst_16 {dimension_numbers = #tpu.dot_dimension_numbers<[1], [0], [0], [1], [0, 0, 1, 1], [], []>} : vector<16x32xbf16>, vector<32x32xbf16>, vector<16x32xf32> -> vector<16x32xf32>
    %43 = vector.extract_strided_slice %1 {offsets = [1, 0], sizes = [1, 32], strides = [1, 1]} : vector<8x128xf32> to vector<1x32xf32>
    %44 = vector.broadcast %43 : vector<1x32xf32> to vector<16x32xf32>
    %45 = arith.addf %42, %44 : vector<16x32xf32>
    %46 = arith.addf %45, %12 : vector<16x32xf32>
    %47 = vector.extract_strided_slice %1 {offsets = [2, 0], sizes = [1, 32], strides = [1, 1]} : vector<8x128xf32> to vector<1x32xf32>
    %48 = vector.extract_strided_slice %1 {offsets = [3, 0], sizes = [1, 32], strides = [1, 1]} : vector<8x128xf32> to vector<1x32xf32>
    %cst_17 = arith.constant dense<0.000000e+00> : vector<16xf32>
    %49 = vector.multi_reduction <add>, %46, %cst_17 [1] : vector<16x32xf32> to vector<16xf32>
    %50 = vector.shape_cast %49 : vector<16xf32> to vector<16x1xf32>
    %cst_18 = arith.constant 3.200000e+01 : f32
    %51 = vector.broadcast %cst_18 : f32 to vector<16x1xf32>
    %52 = arith.divf %50, %51 : vector<16x1xf32>
    %53 = arith.mulf %46, %46 : vector<16x32xf32>
    %cst_19 = arith.constant dense<0.000000e+00> : vector<16xf32>
    %54 = vector.multi_reduction <add>, %53, %cst_19 [1] : vector<16x32xf32> to vector<16xf32>
    %55 = vector.shape_cast %54 : vector<16xf32> to vector<16x1xf32>
    %cst_20 = arith.constant 3.200000e+01 : f32
    %56 = vector.broadcast %cst_20 : f32 to vector<16x1xf32>
    %57 = arith.divf %55, %56 : vector<16x1xf32>
    %58 = arith.mulf %52, %52 : vector<16x1xf32>
    %59 = arith.subf %57, %58 : vector<16x1xf32>
    %60 = vector.broadcast %52 : vector<16x1xf32> to vector<16x32xf32>
    %61 = arith.subf %46, %60 : vector<16x32xf32>
    %cst_21 = arith.constant 9.99999974E-6 : f32
    %62 = vector.broadcast %cst_21 : f32 to vector<16x1xf32>
    %63 = arith.addf %59, %62 : vector<16x1xf32>
    %64 = math.rsqrt %63 : vector<16x1xf32>
    %65 = vector.broadcast %64 : vector<16x1xf32> to vector<16x32xf32>
    %66 = arith.mulf %61, %65 : vector<16x32xf32>
    %67 = vector.broadcast %47 : vector<1x32xf32> to vector<16x32xf32>
    %68 = arith.mulf %66, %67 : vector<16x32xf32>
    %69 = vector.broadcast %48 : vector<1x32xf32> to vector<16x32xf32>
    %70 = arith.addf %68, %69 : vector<16x32xf32>
    %71 = arith.truncf %70 : vector<16x32xf32> to vector<16x32xbf16>
    %72 = vector.extract_strided_slice %4 {offsets = [0, 0], sizes = [32, 64], strides = [1, 1]} : vector<64x128xbf16> to vector<32x64xbf16>
    %cst_22 = arith.constant dense<0.000000e+00> : vector<16x64xf32>
    %73 = tpu.matmul %71, %72, %cst_22 {dimension_numbers = #tpu.dot_dimension_numbers<[1], [0], [0], [1], [0, 0, 1, 1], [], []>} : vector<16x32xbf16>, vector<32x64xbf16>, vector<16x64xf32> -> vector<16x64xf32>
    %74 = vector.extract_strided_slice %1 {offsets = [4, 0], sizes = [1, 64], strides = [1, 1]} : vector<8x128xf32> to vector<1x64xf32>
    %75 = vector.broadcast %74 : vector<1x64xf32> to vector<16x64xf32>
    %76 = arith.addf %73, %75 : vector<16x64xf32>
    %77 = arith.mulf %76, %76 : vector<16x64xf32>
    %78 = arith.mulf %76, %77 : vector<16x64xf32>
    %cst_23 = arith.constant 4.471500e-02 : f32
    %79 = vector.broadcast %cst_23 : f32 to vector<16x64xf32>
    %80 = arith.mulf %79, %78 : vector<16x64xf32>
    %81 = arith.addf %76, %80 : vector<16x64xf32>
    %cst_24 = arith.constant 0.797884583 : f32
    %82 = vector.broadcast %cst_24 : f32 to vector<16x64xf32>
    %83 = arith.mulf %82, %81 : vector<16x64xf32>
    %84 = math.tanh %83 : vector<16x64xf32>
    %cst_25 = arith.constant 1.000000e+00 : f32
    %85 = vector.broadcast %cst_25 : f32 to vector<16x64xf32>
    %86 = arith.addf %85, %84 : vector<16x64xf32>
    %cst_26 = arith.constant 5.000000e-01 : f32
    %87 = vector.broadcast %cst_26 : f32 to vector<16x64xf32>
    %88 = arith.mulf %87, %86 : vector<16x64xf32>
    %89 = arith.mulf %76, %88 : vector<16x64xf32>
    %90 = arith.truncf %89 : vector<16x64xf32> to vector<16x64xbf16>
    %91 = vector.extract_strided_slice %4 {offsets = [0, 64], sizes = [64, 32], strides = [1, 1]} : vector<64x128xbf16> to vector<64x32xbf16>
    %cst_27 = arith.constant dense<0.000000e+00> : vector<16x32xf32>
    %92 = tpu.matmul %90, %91, %cst_27 {dimension_numbers = #tpu.dot_dimension_numbers<[1], [0], [0], [1], [0, 0, 1, 1], [], []>} : vector<16x64xbf16>, vector<64x32xbf16>, vector<16x32xf32> -> vector<16x32xf32>
    %93 = vector.extract_strided_slice %1 {offsets = [5, 0], sizes = [1, 32], strides = [1, 1]} : vector<8x128xf32> to vector<1x32xf32>
    %94 = vector.broadcast %93 : vector<1x32xf32> to vector<16x32xf32>
    %95 = arith.addf %92, %94 : vector<16x32xf32>
    %96 = arith.addf %95, %70 : vector<16x32xf32>
    %97 = vector.extract_strided_slice %1 {offsets = [6, 0], sizes = [1, 32], strides = [1, 1]} : vector<8x128xf32> to vector<1x32xf32>
    %98 = vector.extract_strided_slice %1 {offsets = [7, 0], sizes = [1, 32], strides = [1, 1]} : vector<8x128xf32> to vector<1x32xf32>
    %cst_28 = arith.constant dense<0.000000e+00> : vector<16xf32>
    %99 = vector.multi_reduction <add>, %96, %cst_28 [1] : vector<16x32xf32> to vector<16xf32>
    %100 = vector.shape_cast %99 : vector<16xf32> to vector<16x1xf32>
    %cst_29 = arith.constant 3.200000e+01 : f32
    %101 = vector.broadcast %cst_29 : f32 to vector<16x1xf32>
    %102 = arith.divf %100, %101 : vector<16x1xf32>
    %103 = arith.mulf %96, %96 : vector<16x32xf32>
    %cst_30 = arith.constant dense<0.000000e+00> : vector<16xf32>
    %104 = vector.multi_reduction <add>, %103, %cst_30 [1] : vector<16x32xf32> to vector<16xf32>
    %105 = vector.shape_cast %104 : vector<16xf32> to vector<16x1xf32>
    %cst_31 = arith.constant 3.200000e+01 : f32
    %106 = vector.broadcast %cst_31 : f32 to vector<16x1xf32>
    %107 = arith.divf %105, %106 : vector<16x1xf32>
    %108 = arith.mulf %102, %102 : vector<16x1xf32>
    %109 = arith.subf %107, %108 : vector<16x1xf32>
    %110 = vector.broadcast %102 : vector<16x1xf32> to vector<16x32xf32>
    %111 = arith.subf %96, %110 : vector<16x32xf32>
    %cst_32 = arith.constant 9.99999974E-6 : f32
    %112 = vector.broadcast %cst_32 : f32 to vector<16x1xf32>
    %113 = arith.addf %109, %112 : vector<16x1xf32>
    %114 = math.rsqrt %113 : vector<16x1xf32>
    %115 = vector.broadcast %114 : vector<16x1xf32> to vector<16x32xf32>
    %116 = arith.mulf %111, %115 : vector<16x32xf32>
    %117 = vector.broadcast %97 : vector<1x32xf32> to vector<16x32xf32>
    %118 = arith.mulf %116, %117 : vector<16x32xf32>
    %119 = vector.broadcast %98 : vector<1x32xf32> to vector<16x32xf32>
    %120 = arith.addf %118, %119 : vector<16x32xf32>
    %c0_33 = arith.constant 0 : index
    %c0_34 = arith.constant 0 : index
    %121 = vector.load %arg3[%c0_33, %c0_34] : memref<16x32xf32, #tpu.memory_space<vmem>>, vector<16x32xf32>
    tpu.vector_store %arg3[%c0_33, %c0_34], %120 {strides = array<i32>} : memref<16x32xf32, #tpu.memory_space<vmem>>, vector<16x32xf32>,
    return
  }
}

</mosaic_0001>

<bundles_post_ra>
// kernel: longformer_xl_layer.1
= control target key start
LH: loop header
LB: loop body
LE: loop exit
PB: predicated region body
PF: predicated region fallthrough
CT: control target
= control target key end

     0   :  { %8 = vsyncpa [#allocation3], 0  ;;  %s1461_s0 = inlined_call_operand.vmem [shape: f32[32,32], index: 0, kind: input, shape index: {}]   ;;  %s1462_s1 = inlined_call_operand.hbm [shape: bf16[352,128], index: 1, kind: input, shape index: {}]   ;;  %s1463_s2 = inlined_call_operand.vmem [shape: f32[24,128], index: 2, kind: input, shape index: {}]   ;;  %s1464_s3 = inlined_call_operand.hbm [shape: f32[16,32], index: 3, kind: output, shape index: {}]  }
   0x1   :  { %9 = vsyncpa [#allocation4], 0  ;;  %s16_s14 = sshll.u32 %s1462_s1, 4  ;;  %s1036_s15 = smov [#allocation2]   ;;  %s17_s14 = int_to_ptr.hbm [resolvable:$true] %s16_s14 }
   0x2   :  { %s18_s16 = sshll.u32 %s1036_s15, 4  ;;  %s1037_s17 = smov 64   ;;  %s19_s16 = int_to_ptr.vmem [resolvable:$true] %s18_s16 }
   0x3   :  { %s1038_s18 = smov 4  }
   0x4   :  { %24 = dma.hbm_to_vmem [thread:$0]  %s17_s14, 2816, %s19_s16, [#allocation3], %s1037_s17, %s1037_s17, %s1038_s18  }
   0x5   :  { %1032 = dma.done.wait [#allocation3], 2816  }
   0x6   :  { %1033 = vsyncadd [#allocation3], 4294964480  ;;  %v1071_v0 = vld [vmem:[#allocation2 + $0x8] sm:$0xff]  ;;  %v1073_v1 = vld [vmem:[#allocation2] sm:$0xff]  ;;  %vm100_vm3 = vcmask 261120   ;;  %v1039_v22 = vmov 0  }
   0x7   :  { %v951_v2 = vld [vmem:[#allocation2 + $0xa8] sm:$0xff]   ;;  %v949_v3 = vld [vmem:[#allocation2 + $0x98] sm:$0xff]   ;;  %113 = vmatpush.bf16.msra.mxu0 %v1071_v0  ;;  %v34_v4 = vld [vmem:[%s1461_s0] sm:$0xff]  ;;  %s1040_s22 = smov 32   ;;  %v1223_v24 = vunpack.c.l.b16 %v1039_v22  ;;  %v1226_v25 = vunpack.c.h.b16 %v1039_v22  ;;  %s1041_s28 = smov 96  }
   0x8   :  { %v35_v5 = vld [vmem:[%s1461_s0 + $0x8] sm:$0xff]  ;;  %v942_v6 = vunpack.c.l.bf16 %v951_v2  ;;  %v943_v7 = vunpack.c.h.bf16 %v951_v2  ;;  %v934_v8 = vunpack.c.l.bf16 %v949_v3  ;;  %v950_v9 = vld [vmem:[#allocation2 + $0xa0] sm:$0xff]   ;;  %v935_v10 = vunpack.c.h.bf16 %v949_v3  ;;  %v948_v13 = vld [vmem:[#allocation2 + $0x90] sm:$0xff]   ;;  %s823_s9 = sshll.u32 %s1464_s3, 4  ;;  %s1044_s10 = smov 128   ;;  %s824_s9 = int_to_ptr.hbm [resolvable:$true] %s823_s9 }
   0x9   :  { %v938_v11 = vunpack.c.l.bf16 %v950_v9  ;;  %v939_v12 = vunpack.c.h.bf16 %v950_v9  ;;  %v947_v14 = vld [vmem:[#allocation2 + $0x88] sm:$0xff]   ;;  %v930_v17 = vunpack.c.l.bf16 %v948_v13  ;;  %v945_v18 = vld [vmem:[#allocation2 + $0x78] sm:$0xff]   ;;  %v85_v19 = vpack.c.bf16 %v35_v5, %v34_v4  ;;  %v946_v31 = vld [vmem:[#allocation2 + $0x80] sm:$0xff]   ;;  %s1045_s11 = smov 8  }
   0xa   :  { %vm156_vm0 = vcmp.gt.f32.partialorder %v942_v6, 0.0  ;;  %vm1082_vm1 = vcmp.gt.f32.partialorder %v943_v7, 0.0  ;;  %vm1086_vm2 = vcmp.gt.f32.partialorder %v934_v8, 0.0  ;;  %vm1090_vm5 = vcmp.gt.f32.partialorder %v935_v10, 0.0  ;;  %v1184_v61 = vld [vmem:[%s1461_s0 + $0x10] sm:$0xff]  ;;  %v1189_v62 = vld [vmem:[%s1461_s0 + $0x18] sm:$0xff] }
   0xb   :  { %vm188_vm4 = vmpackc.low %vm156_vm0, %vm156_vm0  ;;  %v931_v21 = vunpack.c.h.bf16 %v948_v13  ;;  %114 = vmatpush.bf16.msra.mxu0 %v1073_v1  ;;  %vm1099_vm7 = vcmp.gt.f32.partialorder %v938_v11, 0.0  ;;  %vm1103_vm8 = vcmp.gt.f32.partialorder %v939_v12, 0.0  ;;  %v926_v26 = vunpack.c.l.bf16 %v947_v14  ;;  %v1219_v15 = vld [vmem:[%s1463_s2] sm:$0xff] }
   0xc   :  { %vm189_vm6 = vmpackc.low %vm1082_vm1, %vm1082_vm1  ;;  %v204_v23 = vsel %vm188_vm4, 65537, %v1039_v22  ;;  %v927_v29 = vunpack.c.h.bf16 %v947_v14  ;;  %v918_v30 = vunpack.c.l.bf16 %v945_v18  ;;  %vm1115_vm11 = vcmp.gt.f32.partialorder %v930_v17, 0.0 }
   0xd   :  { %v205_v27 = vsel %vm189_vm6, 65537, %v1039_v22  ;;  %v220_v28 = vunpack.c.l.b16 %v204_v23  ;;  %vm184_vm9 = vmpackc.low %vm1086_vm2, %vm1086_vm2  ;;  %vm1119_vm12 = vcmp.gt.f32.partialorder %v931_v21, 0.0  ;;  %vm1128_vm14 = vcmp.gt.f32.partialorder %v926_v26, 0.0 }
   0xe   :  { %v221_v32 = vunpack.c.l.b16 %v205_v27  ;;  %vm185_vm10 = vmpackc.low %vm1090_vm5, %vm1090_vm5  ;;  %v200_v33 = vsel %vm184_vm9, 65537, %v1039_v22  ;;  %844 = vmatmul.msk.bf16.vlgmr.msra.gmra.mxu0 %vm100_vm3, %v85_v19  ;;  %v919_v39 = vunpack.c.h.bf16 %v945_v18  ;;  %v922_v43 = vunpack.c.l.bf16 %v946_v31 }
   0xf   :  { %v201_v36 = vsel %vm185_vm10, 65537, %v1039_v22  ;;  %v216_v37 = vunpack.c.l.b16 %v200_v33  ;;  %vm186_vm13 = vmpackc.low %vm1099_vm7, %vm1099_vm7  ;;  %vm1142_vm1 = vcmp.gt.f32.partialorder %v927_v29, 0.0  ;;  %vm1146_vm2 = vcmp.gt.f32.partialorder %v918_v30, 0.0 }
  0x10   :  { %v1132_v40 = vpack.c.b16 %v221_v32, %v220_v28  ;;  %v217_v41 = vunpack.c.l.b16 %v201_v36  ;;  %vm187_vm15 = vmpackc.low %vm1103_vm8, %vm1103_vm8  ;;  %v202_v42 = vsel %vm186_vm13, 65537, %v1039_v22  ;;  %v923_v47 = vunpack.c.h.bf16 %v946_v31 }
  0x11   :  { %v203_v44 = vsel %vm187_vm15, 65537, %v1039_v22  ;;  %vm182_vm0 = vmpackc.low %vm1115_vm11, %vm1115_vm11  ;;  %v218_v49 = vunpack.c.l.b16 %v202_v42  ;;  %vm1162_vm6 = vcmp.gt.f32.partialorder %v919_v39, 0.0  ;;  %vm146_vm8 = vcmp.gt.f32.partialorder %v922_v43, 0.0  ;;  %v944_v39 = vld [vmem:[#allocation2 + $0x70] sm:$0xff]  }
  0x12   :  { %244 = vrot.lane.b32.xlu0 %v1132_v40, %s1040_s22  ;;  %v1152_v48 = vpack.c.b16 %v217_v41, %v216_v37  ;;  %v219_v50 = vunpack.c.l.b16 %v203_v44  ;;  %vm183_vm4 = vmpackc.low %vm1119_vm12, %vm1119_vm12  ;;  %v198_v51 = vsel %vm182_vm0, 65537, %v1039_v22  ;;  %vm147_vm10 = vcmp.gt.f32.partialorder %v923_v47, 0.0 }
  0x13   :  { %v199_v52 = vsel %vm183_vm4, 65537, %v1039_v22  ;;  %vm180_vm5 = vmpackc.low %vm1128_vm14, %vm1128_vm14  ;;  %v214_v54 = vunpack.c.l.b16 %v198_v51  ;;  %v86_v9 = vpack.c.bf16 %v1189_v62, %v1184_v61  ;;  %v87_v17 = vperm.slane %v1219_v15, 0 }
  0x14   :  { %240 = vrot.lane.b32.xlu1 %v1152_v48, %s1040_s22  ;;  %v215_v55 = vunpack.c.l.b16 %v199_v52  ;;  %vm181_vm7 = vmpackc.low %vm1142_vm1, %vm1142_vm1  ;;  %v196_v56 = vsel %vm180_vm5, 65537, %v1039_v22  ;;  %v1176_v59 = vpack.c.b16 %v219_v50, %v218_v49  ;;  %v914_v46 = vunpack.c.l.bf16 %v944_v39 }
  0x15   :  { %v197_v57 = vsel %vm181_vm7, 65537, %v1039_v22  ;;  %v212_v58 = vunpack.c.l.b16 %v196_v56  ;;  %vm176_vm9 = vmpackc.low %vm1146_vm2, %vm1146_vm2  ;;  %v915_v49 = vunpack.c.h.bf16 %v944_v39 }
  0x16   :  { %v213_v60 = vunpack.c.l.b16 %v197_v57  ;;  %vm177_vm11 = vmpackc.low %vm1162_vm6, %vm1162_vm6  ;;  %v1191_v63 = vpack.c.b16 %v215_v55, %v214_v54  ;;  %v192_v4 = vsel %vm176_vm9, 65537, %v1039_v22  ;;  %vm1262_vm7 = vcmp.gt.f32.partialorder %v914_v46, 0.0 }
  0x17   :  { %vm178_vm12 = vmpackc.low %vm146_vm8, %vm146_vm8  ;;  %v193_v5 = vsel %vm177_vm11, 65537, %v1039_v22  ;;  %v208_v10 = vunpack.c.l.b16 %v192_v4  ;;  %vm1271_vm8 = vcmp.gt.f32.partialorder %v915_v49, 0.0 }
  0x18   :  { %v1193_v2 = vpack.c.b16 %v213_v60, %v212_v58  ;;  %vm179_vm13 = vmpackc.low %vm147_vm10, %vm147_vm10  ;;  %v194_v3 = vsel %vm178_vm12, 65537, %v1039_v22  ;;  %v209_v11 = vunpack.c.l.b16 %v193_v5 }
  0x19   :  { %v195_v6 = vsel %vm179_vm13, 65537, %v1039_v22  ;;  %v210_v7 = vunpack.c.l.b16 %v194_v3 }
  0x1a   :  { %242 = vrot.lane.b32.xlu0 %v1176_v59, %s1040_s22  ;;  %236 = vrot.lane.b32.xlu2 %v1193_v2, %s1040_s22  ;;  %v211_v8 = vunpack.c.l.b16 %v195_v6  ;;  %v1210_v13 = vpack.c.b16 %v209_v11, %v208_v10 }
  0x1c   :  { %238 = vrot.lane.b32.xlu1 %v1191_v63, %s1040_s22  ;;  %v1207_v12 = vpack.c.b16 %v211_v8, %v210_v7 }
  0x1e   :  { %845 = vmatmul.msk.bf16.gmra.mxu0 %vm100_vm3, %v86_v9 }
  0x22   :  { %234 = vrot.lane.b32.xlu2 %v1207_v12, %s1040_s22 }
  0x24   :  { %232 = vrot.lane.b32.xlu1 %v1210_v13, %s1040_s22 }
  0x74   :  { %v1232_v37 = vpop.permute.xlu2 %236 }
  0x7c   :  { %v235_v7 = vpop.permute.xlu2 %234 }
  0x84   :  { %v245_v14 = vpop.permute.xlu0 %244 }
  0x85   :  { %v295_v41 = vunpack.c.l.b16 %v245_v14  ;;  %v296_v42 = vunpack.c.h.b16 %v245_v14 }
  0x86   :  { %v241_v18 = vpop.permute.xlu1 %240 }
  0x87   :  { %v281_v50 = vunpack.c.l.b16 %v241_v18  ;;  %v282_v51 = vunpack.c.h.b16 %v241_v18  ;;  %vm1253_vm5 = vcmp.ne.s32.totalorder %v295_v41, %v1223_v24  ;;  %vm1258_vm6 = vcmp.ne.s32.totalorder %v296_v42, %v1226_v25 }
  0x88   :  { %vm301_vm9 = vmpackc.low %vm1258_vm6, %vm1253_vm5 }
  0x89   :  { %vm1281_vm10 = vcmp.ne.s32.totalorder %v281_v50, %v1223_v24  ;;  %vm1286_vm11 = vcmp.ne.s32.totalorder %v282_v51, %v1226_v25 }
  0x8b   :  { %v116_v16 = vpop.f32.mrf.mxu0 }
  0x8c   :  { %v243_v19 = vpop.permute.xlu0 %242  ;;  %v117_v20 = vadd.f32 %v116_v16, %v87_v17  ;;  %v260_v16 = vunpack.c.l.b16 %v235_v7 }
  0x8d   :  { %v288_v21 = vunpack.c.l.b16 %v243_v19  ;;  %v289_v23 = vunpack.c.h.b16 %v243_v19 }
  0x8e   :  { %v158_v27 = vpack.c.bf16 %v117_v20, %v117_v20  ;;  %v239_v30 = vpop.permute.xlu1 %238 }
  0x8f   :  { %vm292_vm14 = vcmp.ne.s32.totalorder %v288_v21, %v1223_v24  ;;  %vm293_vm15 = vcmp.ne.s32.totalorder %v289_v23, %v1226_v25  ;;  %v274_v34 = vunpack.c.l.b16 %v239_v30  ;;  %v275_v35 = vunpack.c.h.b16 %v239_v30 }
  0x90   :  { %v166_v31 = vunpack.c.l.b16 %v158_v27  ;;  %vm294_vm0 = vmpackc.low %vm293_vm15, %vm292_vm14  ;;  %v268_v30 = vunpack.c.h.b16 %v1232_v37 }
  0x91   :  { %vm1237_vm1 = vcmp.ne.s32.totalorder %v274_v34, %v1223_v24  ;;  %vm1242_vm2 = vcmp.ne.s32.totalorder %v275_v35, %v1226_v25  ;;  %vm174_vm14 = vmpackc.low %vm1262_vm7, %vm1262_vm7 }
  0x92   :  { %vm280_vm4 = vmpackc.low %vm1242_vm2, %vm1237_vm1  ;;  %v190_v19 = vsel %vm174_vm14, 65537, %v1039_v22  ;;  %vm264_vm2 = vcmp.ne.s32.totalorder %v260_v16, %v1223_v24  ;;  %vm272_vm6 = vcmp.ne.s32.totalorder %v268_v30, %v1226_v25  ;;  %v39_v16 = vld [vmem:[%s1463_s2 + $0x8] sm:$0xff] }
  0x93   :  { %v118_v26 = vpop.f32.mrf.mxu0  ;;  %vm175_vm15 = vmpackc.low %vm1271_vm8, %vm1271_vm8  ;;  %v206_v27 = vunpack.c.l.b16 %v190_v19 }
  0x94   :  { %v119_v28 = vadd.f32 %v118_v26, %v87_v17  ;;  %v191_v20 = vsel %vm175_vm15, 65537, %v1039_v22 }
  0x96   :  { %v159_v29 = vpack.c.bf16 %v119_v28, %v119_v28  ;;  %v233_v45 = vpop.permute.xlu1 %232  ;;  %v207_v28 = vunpack.c.l.b16 %v191_v20 }
  0x97   :  { %v253_v52 = vunpack.c.l.b16 %v233_v45  ;;  %v254_v53 = vunpack.c.h.b16 %v233_v45 }
  0x98   :  { %v167_v32 = vunpack.c.l.b16 %v159_v29  ;;  %v222_v22 = vpack.c.b16 %v207_v28, %v206_v27  ;;  %v267_v29 = vunpack.c.l.b16 %v1232_v37  ;;  %v911_v27 = vld [vmem:[#allocation2 + $0x68] sm:$0xff]  ;;  %v910_v28 = vld [vmem:[#allocation2 + $0x60] sm:$0xff] }
  0x99   :  { %vm1295_vm12 = vcmp.ne.s32.totalorder %v253_v52, %v1223_v24  ;;  %vm258_vm13 = vcmp.ne.s32.totalorder %v254_v53, %v1226_v25  ;;  %515 = vmatpush.bf16.msra.mxu2 %v911_v27  ;;  %v1042_v27 = vmov 32.0  }
  0x9a   :  { %v1230_v33 = vpack.c.b16 %v167_v32, %v166_v31  ;;  %vm259_vm1 = vmpackc.low %vm258_vm13, %vm1295_vm12  ;;  %vm271_vm5 = vcmp.ne.s32.totalorder %v267_v29, %v1223_v24 }
  0x9b   :  { %v121_v36 = vpop.f32.mrf.mxu0  ;;  %vm273_vm8 = vmpackc.low %vm272_vm6, %vm271_vm5 }
  0x9c   :  { %v308_v38 = vsel %vm294_vm0, %v1230_v33, 0  ;;  %v1246_v47 = vadd.f32 %v121_v36, %v87_v17  ;;  %v306_v3 = vsel %vm280_vm4, %v1230_v33, 0  ;;  %vm287_vm0 = vmpackc.low %vm1286_vm11, %vm1281_vm10 }
  0x9d   :  { %411 = vrot.lane.b32.xlu2 %v308_v38, %s1041_s28  ;;  %516 = vmatpush.bf16.msra.mxu2 %v910_v28 }
  0x9e   :  { %v160_v58 = vpack.c.bf16 %v1246_v47, %v1246_v47 }
  0xa0   :  { %v168_v11 = vunpack.c.l.b16 %v160_v58 }
  0xa3   :  { %v123_v56 = vpop.f32.mrf.mxu0 }
  0xa4   :  { %v1268_v60 = vadd.f32 %v123_v56, %v87_v17  ;;  %v261_v17 = vunpack.c.h.b16 %v235_v7 }
  0xa5   :  { %407 = vrot.lane.b32.xlu2 %v306_v3, %s1041_s28 }
  0xa6   :  { %v161_v8 = vpack.c.bf16 %v1268_v60, %v1268_v60  ;;  %v390_v9 = vpack.c.bf16 %v1268_v60, %v1246_v47  ;;  %vm265_vm4 = vcmp.ne.s32.totalorder %v261_v17, %v1226_v25 }
  0xa7   :  { %vm266_vm7 = vmpackc.low %vm265_vm4, %vm264_vm2 }
  0xa8   :  { %v169_v14 = vunpack.c.l.b16 %v161_v8  ;;  %v304_v31 = vsel %vm266_vm7, %v1230_v33, 0 }
  0xaa   :  { %v1312_v18 = vpack.c.b16 %v169_v14, %v168_v11 }
  0xac   :  { %v309_v21 = vsel %vm301_vm9, %v1312_v18, 0  ;;  %v307_v23 = vsel %vm287_vm0, %v1312_v18, 0  ;;  %v303_v26 = vsel %vm259_vm1, %v1312_v18, 0  ;;  %v305_v32 = vsel %vm273_vm8, %v1312_v18, 0 }
  0xad   :  { %413 = vrot.lane.b32.xlu0 %v309_v21, %s1041_s28  ;;  %409 = vrot.lane.b32.xlu1 %v307_v23, %s1041_s28  ;;  %v40_v21 = vld [vmem:[%s1463_s2 + $0x10] sm:$0xff]  ;;  %s1043_s2 = smov [#allocation5]  }
  0xae   :  { %401 = vrot.lane.b32.xlu2 %v303_v26, %s1041_s28  ;;  %s821_s6 = sshll.u32 %s1043_s2, 4  ;;  %s822_s6 = int_to_ptr.vmem [resolvable:$true] %s821_s6 }
  0xb5   :  { %230 = vrot.lane.b32.xlu0 %v222_v22, %s1040_s22  ;;  %403 = vrot.lane.b32.xlu1 %v304_v31, %s1041_s28 }
  0xbd   :  { %405 = vrot.lane.b32.xlu0 %v305_v32, %s1041_s28 }
  0xf7   :  { %v412_v36 = vpop.permute.xlu2 %411 }
  0xf8   :  { %v437_v41 = vsel %vm100_vm3, %v412_v36, 0  ;;  %v907_v36 = vld [vmem:[#allocation2 + $0x48] sm:$0xff] }
  0xff   :  { %v408_v45 = vpop.permute.xlu2 %407 }
 0x100   :  { %v431_v46 = vsel %vm100_vm3, %v408_v45, 0 }
 0x108   :  { %v402_v53 = vpop.permute.xlu2 %401 }
 0x11f   :  { %v414_v34 = vpop.permute.xlu0 %413  ;;  %v410_v43 = vpop.permute.xlu1 %409 }
 0x120   :  { %v440_v35 = vsel %vm100_vm3, %v414_v34, 0  ;;  %v434_v44 = vsel %vm100_vm3, %v410_v43, 0 }
 0x121   :  { %442 = vmatpush.bf16.xpose.msra.mxu1 %v440_v35  ;;  %v908_v35 = vld [vmem:[#allocation2 + $0x50] sm:$0xff] }
 0x127   :  { %v231_v37 = vpop.permute.xlu0 %230  ;;  %v404_v51 = vpop.permute.xlu1 %403 }
 0x128   :  { %v246_v38 = vunpack.c.l.b16 %v231_v37  ;;  %v247_v39 = vunpack.c.h.b16 %v231_v37  ;;  %v425_v52 = vsel %vm100_vm3, %v404_v51, 0  ;;  %v906_v37 = vld [vmem:[#allocation2 + $0x40] sm:$0xff] }
 0x129   :  { %443 = vmatpush.bf16.xpose.msra.mxu1 %v437_v41 }
 0x12a   :  { %vm250_vm9 = vcmp.ne.s32.totalorder %v246_v38, %v1223_v24  ;;  %vm251_vm10 = vcmp.ne.s32.totalorder %v247_v39, %v1226_v25  ;;  %v904_v38 = vld [vmem:[#allocation2 + $0x30] sm:$0xff] }
 0x12b   :  { %vm252_vm11 = vmpackc.low %vm251_vm10, %vm250_vm9 }
 0x12c   :  { %v302_v42 = vsel %vm252_vm11, %v1230_v33, 0 }
 0x12d   :  { %399 = vrot.lane.b32.xlu0 %v302_v42, %s1041_s28 }
 0x12f   :  { %v406_v49 = vpop.permute.xlu0 %405 }
 0x130   :  { %v428_v50 = vsel %vm100_vm3, %v406_v49, 0 }
 0x131   :  { %444 = vmatpush.bf16.xpose.msra.mxu1 %v434_v44 }
 0x135   :  { %324 = vrot.lane.b32.xlu0 %v1132_v40, %s1037_s17  ;;  %v422_v40 = vsel %vm100_vm3, %v402_v53, 0 }
 0x139   :  { %445 = vmatpush.bf16.xpose.msra.mxu1 %v431_v46 }
 0x13d   :  { %322 = vrot.lane.b32.xlu0 %v1176_v59, %s1037_s17 }
 0x141   :  { %446 = vmatpush.bf16.xpose.msra.mxu1 %v428_v50 }
 0x145   :  { %320 = vrot.lane.b32.xlu0 %v1152_v48, %s1037_s17 }
 0x149   :  { %447 = vmatpush.bf16.xpose.msra.mxu1 %v425_v52 }
 0x14d   :  { %318 = vrot.lane.b32.xlu0 %v1191_v63, %s1037_s17 }
 0x151   :  { %448 = vmatpush.bf16.xpose.msra.mxu1 %v422_v40 }
 0x155   :  { %316 = vrot.lane.b32.xlu0 %v1193_v2, %s1037_s17 }
 0x15d   :  { %310 = vrot.lane.b32.xlu0 %v222_v22, %s1037_s17  ;;  %v909_v22 = vld [vmem:[#allocation2 + $0x58] sm:$0xff] }
 0x15e   :  { %517 = vmatpush.bf16.msra.mxu2 %v909_v22 }
 0x162   :  { %518 = vmatpush.bf16.msra.mxu2 %v908_v35 }
 0x166   :  { %519 = vmatpush.bf16.msra.mxu2 %v907_v36 }
 0x16a   :  { %520 = vmatpush.bf16.msra.mxu2 %v906_v37  ;;  %v901_v37 = vld [vmem:[#allocation2 + $0x18] sm:$0xff] }
 0x19f   :  { %v400_v59 = vpop.permute.xlu0 %399 }
 0x1a0   :  { %v419_v54 = vsel %vm100_vm3, %v400_v59, 0 }
 0x1a1   :  { %449 = vmatpush.bf16.xpose.msra.mxu1 %v419_v54 }
 0x1a7   :  { %v325_v48 = vpop.permute.xlu0 %324 }
 0x1a8   :  { %v375_v55 = vunpack.c.l.b16 %v325_v48  ;;  %v376_v56 = vunpack.c.h.b16 %v325_v48  ;;  %846 = vmatmul.msk.bf16.vlgmr.msra.gmra.mxu1 %vm100_vm3, %v390_v9 }
 0x1aa   :  { %vm379_vm12 = vcmp.ne.s32.totalorder %v375_v55, %v1223_v24  ;;  %vm380_vm13 = vcmp.ne.s32.totalorder %v376_v56, %v1226_v25 }
 0x1ab   :  { %vm381_vm14 = vmpackc.low %vm380_vm13, %vm379_vm12 }
 0x1ac   :  { %v389_v63 = vsel %vm381_vm14, %v1312_v18, 0 }
 0x1ad   :  { %556 = vrot.lane.b32.xlu0 %v389_v63, %s1037_s17 }
 0x1af   :  { %v323_v2 = vpop.permute.xlu0 %322 }
 0x1b0   :  { %v368_v57 = vunpack.c.l.b16 %v323_v2  ;;  %v369_v58 = vunpack.c.h.b16 %v323_v2 }
 0x1b2   :  { %vm372_vm15 = vcmp.ne.s32.totalorder %v368_v57, %v1223_v24  ;;  %vm373_vm0 = vcmp.ne.s32.totalorder %v369_v58, %v1226_v25 }
 0x1b3   :  { %vm374_vm1 = vmpackc.low %vm373_vm0, %vm372_vm15 }
 0x1b4   :  { %v388_v47 = vsel %vm374_vm1, %v1230_v33, 0 }
 0x1b5   :  { %554 = vrot.lane.b32.xlu0 %v388_v47, %s1037_s17 }
 0x1b7   :  { %v321_v60 = vpop.permute.xlu0 %320 }
 0x1b8   :  { %v361_v31 = vunpack.c.l.b16 %v321_v60  ;;  %v362_v32 = vunpack.c.h.b16 %v321_v60 }
 0x1ba   :  { %vm365_vm12 = vcmp.ne.s32.totalorder %v361_v31, %v1223_v24  ;;  %vm366_vm13 = vcmp.ne.s32.totalorder %v362_v32, %v1226_v25 }
 0x1bb   :  { %vm367_vm14 = vmpackc.low %vm366_vm13, %vm365_vm12  ;;  %vm741_vm13 = vcmask 523264  }
 0x1bf   :  { %v319_v3 = vpop.permute.xlu0 %318 }
 0x1c0   :  { %v354_v29 = vunpack.c.l.b16 %v319_v3  ;;  %v355_v30 = vunpack.c.h.b16 %v319_v3 }
 0x1c2   :  { %vm358_vm9 = vcmp.ne.s32.totalorder %v354_v29, %v1223_v24  ;;  %vm359_vm10 = vcmp.ne.s32.totalorder %v355_v30, %v1226_v25 }
 0x1c3   :  { %vm360_vm11 = vmpackc.low %vm359_vm10, %vm358_vm9 }
 0x1c4   :  { %v386_v34 = vsel %vm360_vm11, %v1230_v33, 0 }
 0x1c7   :  { %v317_v4 = vpop.permute.xlu0 %316 }
 0x1c8   :  { %v347_v5 = vunpack.c.l.b16 %v317_v4  ;;  %v348_v6 = vunpack.c.h.b16 %v317_v4 }
 0x1ca   :  { %vm351_vm2 = vcmp.ne.s32.totalorder %v347_v5, %v1223_v24  ;;  %vm352_vm4 = vcmp.ne.s32.totalorder %v348_v6, %v1226_v25 }
 0x1cb   :  { %vm353_vm7 = vmpackc.low %vm352_vm4, %vm351_vm2 }
 0x1cc   :  { %v385_v7 = vsel %vm353_vm7, %v1312_v18, 0 }
 0x1cd   :  { %548 = vrot.lane.b32.xlu0 %v385_v7, %s1037_s17 }
 0x1cf   :  { %v311_v8 = vpop.permute.xlu0 %310 }
 0x1d0   :  { %v326_v9 = vunpack.c.l.b16 %v311_v8  ;;  %v327_v10 = vunpack.c.h.b16 %v311_v8  ;;  %v581_v8 = vperm.slane %v1219_v15, 1 }
 0x1d2   :  { %vm330_vm5 = vcmp.ne.s32.totalorder %v326_v9, %v1223_v24  ;;  %vm331_vm6 = vcmp.ne.s32.totalorder %v327_v10, %v1226_v25 }
 0x1d3   :  { %vm332_vm8 = vmpackc.low %vm331_vm6, %vm330_vm5 }
 0x1d4   :  { %v382_v11 = vsel %vm332_vm8, %v1230_v33, 0 }
 0x1d5   :  { %542 = vrot.lane.b32.xlu0 %v382_v11, %s1037_s17 }
 0x21f   :  { %v557_v14 = vpop.permute.xlu0 %556 }
 0x220   :  { %566 = vmatpush.bf16.msra.mxu3 %v557_v14 }
 0x225   :  { %v451_v17 = vpop.f32.mrf.mxu1 }
 0x226   :  { %v452_v19 = vadd.f32 %v451_v17, %v39_v16 }
 0x227   :  { %v555_v20 = vpop.permute.xlu0 %554 }
 0x228   :  { %456 = vmax.xlane.f32.xlu1 %v452_v19  ;;  %567 = vmatpush.bf16.msra.mxu3 %v555_v20 }
 0x22d   :  { %v453_v23 = vpop.f32.mrf.mxu1 }
 0x22e   :  { %v454_v26 = vadd.f32 %v453_v23, %v40_v21 }
 0x230   :  { %458 = vmax.xlane.f32.xlu2 %v454_v26 }
 0x23f   :  { %v549_v63 = vpop.permute.xlu0 %548 }
 0x241   :  { %312 = vrot.lane.b32.xlu1 %v1210_v13, %s1037_s17  ;;  %v387_v13 = vsel %vm367_vm14, %v1312_v18, 0 }
 0x247   :  { %v543_v57 = vpop.permute.xlu0 %542 }
 0x248   :  { %314 = vrot.lane.b32.xlu2 %v1207_v12, %s1037_s17  ;;  %v905_v12 = vld [vmem:[#allocation2 + $0x38] sm:$0xff] }
 0x249   :  { %550 = vrot.lane.b32.xlu1 %v386_v34, %s1037_s17  ;;  %521 = vmatpush.bf16.msra.mxu2 %v905_v12 }
 0x24d   :  { %522 = vmatpush.bf16.msra.mxu2 %v904_v38  ;;  %v900_v38 = vld [vmem:[#allocation2 + $0x10] sm:$0xff] }
 0x250   :  { %552 = vrot.lane.b32.xlu2 %v387_v13, %s1037_s17 }
 0x251   :  { %691 = vmatpush.bf16.msrb.mxu2 %v901_v37 }
 0x255   :  { %692 = vmatpush.bf16.msrb.mxu2 %v900_v38 }
 0x29b   :  { %v457_v39 = vpop.xlane.xlu1 %456 }
 0x29c   :  { %v460_v41 = vsub.f32 %v452_v19, %v457_v39 }
 0x29e   :  { %v462_v42 = vmul.f32 1.442695, %v460_v41 }
 0x2a0   :  { %962 = vpow2.f32 %v462_v42 }
 0x2a3   :  { %v459_v43 = vpop.xlane.xlu2 %458 }
 0x2a4   :  { %v461_v44 = vsub.f32 %v454_v26, %v459_v43 }
 0x2a6   :  { %v464_v45 = vmul.f32 1.442695, %v461_v44  ;;  %v963_v51 = vpop.eup %962 }
 0x2a8   :  { %964 = vpow2.f32 %v464_v45 }
 0x2ab   :  { %v315_v46 = vpop.permute.xlu2 %314 }
 0x2ac   :  { %v340_v49 = vunpack.c.l.b16 %v315_v46  ;;  %v341_v50 = vunpack.c.h.b16 %v315_v46  ;;  %v902_v46 = vld [vmem:[#allocation2 + $0x20] sm:$0xff] }
 0x2ae   :  { %v965_v52 = vpop.eup %964  ;;  %vm344_vm15 = vcmp.ne.s32.totalorder %v340_v49, %v1223_v24  ;;  %vm345_vm0 = vcmp.ne.s32.totalorder %v341_v50, %v1226_v25  ;;  %v903_v49 = vld [vmem:[#allocation2 + $0x28] sm:$0xff] }
 0x2af   :  { %v466_v53 = vpack.c.bf16 %v965_v52, %v963_v51  ;;  %vm346_vm1 = vmpackc.low %vm345_vm0, %vm344_vm15 }
 0x2b0   :  { %v384_v40 = vsel %vm346_vm1, %v1230_v33, 0 }
 0x2b1   :  { %523 = vmatmul.bf16.vlgmr.msra.gmra.mxu2 %v466_v53  ;;  %546 = vrot.lane.b32.xlu2 %v384_v40, %s1037_s17 }
 0x2b3   :  { %v313_v59 = vpop.permute.xlu1 %312  ;;  %v553_v54 = vpop.permute.xlu2 %552 }
 0x2b4   :  { %v333_v48 = vunpack.c.l.b16 %v313_v59  ;;  %v334_v55 = vunpack.c.h.b16 %v313_v59  ;;  %568 = vmatpush.bf16.msra.mxu3 %v553_v54 }
 0x2b6   :  { %vm337_vm2 = vcmp.ne.s32.totalorder %v333_v48, %v1223_v24  ;;  %vm338_vm4 = vcmp.ne.s32.totalorder %v334_v55, %v1226_v25 }
 0x2b7   :  { %vm339_vm7 = vmpackc.low %vm338_vm4, %vm337_vm2 }
 0x2b8   :  { %v383_v56 = vsel %vm339_vm7, %v1312_v18, 0 }
 0x2b9   :  { %544 = vrot.lane.b32.xlu1 %v383_v56, %s1037_s17  ;;  %584 = vrot.lane.b32.xlu2 %v1071_v0, %s1040_s22 }
 0x2bb   :  { %v551_v33 = vpop.permute.xlu1 %550 }
 0x2bc   :  { %569 = vmatpush.bf16.msra.mxu3 %v551_v33 }
 0x2c0   :  { %570 = vmatpush.bf16.msra.mxu3 %v549_v63 }
 0x2c1   :  { %582 = vrot.lane.b32.xlu1 %v1073_v1, %s1040_s22 }
 0x30b   :  { %v547_v2 = vpop.permute.xlu2 %546 }
 0x30c   :  { %571 = vmatpush.bf16.msra.mxu3 %v547_v2 }
 0x313   :  { %v585_v24 = vpop.permute.xlu2 %584 }
 0x314   :  { %597 = vmatpush.bf16.msrb.mxu0 %v585_v24 }
 0x32b   :  { %v545_v25 = vpop.permute.xlu1 %544 }
 0x32c   :  { %572 = vmatpush.bf16.msra.mxu3 %v545_v25 }
 0x330   :  { %573 = vmatpush.bf16.msra.mxu3 %v543_v57 }
 0x333   :  { %v583_v18 = vpop.permute.xlu1 %582 }
 0x334   :  { %v524_v58 = vpop.f32.mrf.mxu2  ;;  %598 = vmatpush.bf16.msrb.mxu0 %v583_v18  ;;  %v662_v18 = vperm.slane %v1219_v15, 2 }
 0x335   :  { %966 = vrcp.f32 %v524_v58 }
 0x33b   :  { %v967_v47 = vpop.eup %966 }
 0x33c   :  { %v526_v0 = vpop.f32.mrf.mxu2  ;;  %v531_v3 = vmul.f32 %v967_v47, %v963_v51 }
 0x33d   :  { %968 = vrcp.f32 %v526_v0 }
 0x33e   :  { %970 = vrcp.f32 %v1042_v27 }
 0x343   :  { %v969_v60 = vpop.eup %968 }
 0x344   :  { %v532_v4 = vmul.f32 %v969_v60, %v965_v52  ;;  %v971_v28 = vpop.eup %970 }
 0x345   :  { %v614_v22 = vmul.f32 32.0, %v971_v28  ;;  %vm618_vm5 = vweird.f32 %v971_v28 }
 0x346   :  { %v533_v5 = vpack.c.bf16 %v532_v4, %v531_v3  ;;  %v665_v4 = vperm.slane %v1219_v15, 3 }
 0x347   :  { %v615_v29 = vsub.f32 1.0, %v614_v22 }
 0x348   :  { %574 = vmatmul.bf16.vlgmr.msra.gmra.mxu3 %v533_v5 }
 0x349   :  { %v616_v30 = vmul.f32 %v971_v28, %v615_v29 }
 0x34b   :  { %v617_v31 = vadd.f32 %v971_v28, %v616_v30 }
 0x3cb   :  { %v575_v1 = vpop.f32.mrf.mxu3 }
 0x3d3   :  { %v577_v6 = vpop.f32.mrf.mxu3 }
 0x3d4   :  { %v580_v7 = vpack.c.bf16 %v577_v6, %v575_v1 }
 0x3d6   :  { %879 = vmatmul.msk.bf16.vlgmr.msrb.gmra.mxu0 %vm100_vm3, %v580_v7 }
 0x453   :  { %v600_v9 = vpop.f32.mrf.mxu0 }
 0x454   :  { %v601_v10 = vadd.f32 %v600_v9, %v581_v8 }
 0x456   :  { %v1414_v11 = vadd.f32 %v601_v10, %v1184_v61  ;;  %v669_v10 = vperm.slane %v1219_v15, 4 }
 0x458   :  { %v607_v14 = vsel %vm100_vm3, %v1414_v11, 0.0  ;;  %v622_v16 = vmul.f32 %v1414_v11, %v1414_v11 }
 0x459   :  { %608 = vadd.xlane.f32.xlu0 %v607_v14 }
 0x45a   :  { %v624_v17 = vsel %vm100_vm3, %v622_v16, 0.0 }
 0x45b   :  { %v602_v19 = vpop.f32.mrf.mxu0  ;;  %625 = vadd.xlane.f32.xlu1 %v624_v17 }
 0x45c   :  { %v603_v20 = vadd.f32 %v602_v19, %v581_v8 }
 0x45e   :  { %v1422_v21 = vadd.f32 %v603_v20, %v1189_v62  ;;  %v1429_v62 = vsel %vm618_vm5, %v971_v28, %v617_v31 }
 0x460   :  { %v610_v23 = vsel %vm100_vm3, %v1422_v21, 0.0  ;;  %v623_v61 = vmul.f32 %v1422_v21, %v1422_v21 }
 0x461   :  { %611 = vadd.xlane.f32.xlu2 %v610_v23 }
 0x462   :  { %v627_v26 = vsel %vm100_vm3, %v623_v61, 0.0 }
 0x463   :  { %628 = vadd.xlane.f32.xlu0 %v627_v26 }
 0x474   :  { %733 = vrot.lane.b32.xlu1 %v902_v46, %s1037_s17 }
 0x477   :  { %731 = vrot.lane.b32.xlu0 %v901_v37, %s1037_s17 }
 0x479   :  { %735 = vrot.lane.b32.xlu2 %v903_v49, %s1037_s17 }
 0x481   :  { %729 = vrot.lane.b32.xlu2 %v900_v38, %s1037_s17 }
 0x4cc   :  { %v609_v32 = vpop.xlane.xlu0 %608 }
 0x4cd   :  { %v620_v34 = vmul.f32 %v1429_v62, %v609_v32 }
 0x4ce   :  { %v626_v13 = vpop.xlane.xlu1 %625 }
 0x4cf   :  { %v632_v35 = vmul.f32 %v620_v34, %v620_v34  ;;  %v630_v36 = vmul.f32 %v626_v13, %v1429_v62  ;;  %v636_v24 = vsub.f32 %v1414_v11, %v620_v34 }
 0x4d1   :  { %v634_v12 = vsub.f32 %v630_v36, %v632_v35 }
 0x4d3   :  { %v638_v39 = vadd.f32 1e-05, %v634_v12 }
 0x4d4   :  { %v612_v41 = vpop.xlane.xlu2 %611 }
 0x4d5   :  { %972 = vrsqrt.f32 %v638_v39  ;;  %v621_v42 = vmul.f32 %v1429_v62, %v612_v41  ;;  %vm646_vm8 = vweird.f32 %v638_v39  ;;  %v718_v41 = vperm.slane %v1219_v15, 5 }
 0x4d6   :  { %v629_v43 = vpop.xlane.xlu0 %628 }
 0x4d7   :  { %v633_v44 = vmul.f32 %v621_v42, %v621_v42  ;;  %v631_v45 = vmul.f32 %v629_v43, %v1429_v62  ;;  %v637_v0 = vsub.f32 %v1422_v21, %v621_v42 }
 0x4d9   :  { %v635_v50 = vsub.f32 %v631_v45, %v633_v44 }
 0x4db   :  { %v973_v51 = vpop.eup %972  ;;  %v639_v52 = vadd.f32 1e-05, %v635_v50 }
 0x4dc   :  { %v641_v53 = vmul.f32 %v973_v51, %v638_v39  ;;  %vm647_vm6 = vweird.f32 %v973_v51  ;;  %v736_v8 = vpop.permute.xlu2 %735 }
 0x4dd   :  { %974 = vrsqrt.f32 %v639_v52  ;;  %vm648_vm9 = vmor %vm646_vm8, %vm647_vm6  ;;  %vm656_vm11 = vweird.f32 %v639_v52  ;;  %749 = vmatpush.bf16.msrb.mxu3 %v736_v8 }
 0x4de   :  { %v642_v40 = vmul.f32 %v973_v51, %v641_v53 }
 0x4e0   :  { %v643_v59 = vmul.f32 0.5, %v642_v40 }
 0x4e2   :  { %v644_v54 = vsub.f32 1.5, %v643_v59 }
 0x4e3   :  { %v975_v48 = vpop.eup %974 }
 0x4e4   :  { %v645_v55 = vmul.f32 %v973_v51, %v644_v54  ;;  %v651_v56 = vmul.f32 %v975_v48, %v639_v52  ;;  %vm657_vm10 = vweird.f32 %v975_v48  ;;  %v730_v16 = vpop.permute.xlu2 %729 }
 0x4e5   :  { %vm658_vm12 = vmor %vm656_vm11, %vm657_vm10 }
 0x4e6   :  { %v652_v33 = vmul.f32 %v975_v48, %v651_v56  ;;  %v649_v63 = vsel %vm648_vm9, %v973_v51, %v645_v55  ;;  %v734_v9 = vpop.permute.xlu1 %733 }
 0x4e7   :  { %v660_v57 = vmul.f32 %v649_v63, %v636_v24  ;;  %750 = vmatpush.bf16.msrb.mxu3 %v734_v9 }
 0x4e8   :  { %v653_v2 = vmul.f32 0.5, %v652_v33 }
 0x4e9   :  { %v663_v3 = vmul.f32 %v662_v18, %v660_v57  ;;  %v732_v11 = vpop.permute.xlu0 %731 }
 0x4ea   :  { %v654_v25 = vsub.f32 1.5, %v653_v2 }
 0x4eb   :  { %v666_v1 = vadd.f32 %v665_v4, %v663_v3  ;;  %751 = vmatpush.bf16.msrb.mxu3 %v732_v11 }
 0x4ec   :  { %v655_v58 = vmul.f32 %v975_v48, %v654_v25 }
 0x4ee   :  { %v659_v47 = vsel %vm658_vm12, %v975_v48, %v655_v58 }
 0x4ef   :  { %v661_v60 = vmul.f32 %v659_v47, %v637_v0  ;;  %752 = vmatpush.bf16.msrb.mxu3 %v730_v16 }
 0x4f1   :  { %v664_v5 = vmul.f32 %v662_v18, %v661_v60 }
 0x4f3   :  { %v667_v6 = vadd.f32 %v665_v4, %v664_v5 }
 0x4f5   :  { %v668_v7 = vpack.c.bf16 %v667_v6, %v666_v1 }
 0x4f7   :  { %888 = vmatmul.msk.bf16.vlgmr.msrb.gmra.mxu2 %vm100_vm3, %v668_v7 }
 0x57a   :  { %v694_v14 = vpop.f32.mrf.mxu2 }
 0x57b   :  { %v695_v17 = vadd.f32 %v694_v14, %v669_v10 }
 0x57d   :  { %v699_v19 = vmul.f32 %v695_v17, %v695_v17 }
 0x57f   :  { %v701_v20 = vmul.f32 %v699_v19, %v695_v17 }
 0x581   :  { %v703_v21 = vmul.f32 0.044715, %v701_v20 }
 0x582   :  { %v696_v23 = vpop.f32.mrf.mxu2 }
 0x583   :  { %v705_v61 = vadd.f32 %v703_v21, %v695_v17  ;;  %v697_v26 = vadd.f32 %v696_v23, %v669_v10  ;;  %v809_v10 = vperm.slane %v1219_v15, 6 }
 0x585   :  { %v707_v27 = vmul.f32 0.7978846, %v705_v61  ;;  %v700_v28 = vmul.f32 %v697_v26, %v697_v26 }
 0x587   :  { %v702_v22 = vmul.f32 %v700_v28, %v697_v26  ;;  %976 = vtanh.f32 %v707_v27 }
 0x589   :  { %v704_v29 = vmul.f32 0.044715, %v702_v22 }
 0x58b   :  { %v706_v30 = vadd.f32 %v704_v29, %v697_v26 }
 0x58d   :  { %v708_v31 = vmul.f32 0.7978846, %v706_v30  ;;  %v977_v32 = vpop.eup %976 }
 0x58e   :  { %v711_v34 = vadd.f32 1.0, %v977_v32 }
 0x58f   :  { %978 = vtanh.f32 %v708_v31 }
 0x590   :  { %v713_v35 = vmul.f32 0.5, %v711_v34 }
 0x592   :  { %v715_v12 = vmul.f32 %v713_v35, %v695_v17 }
 0x595   :  { %v979_v13 = vpop.eup %978 }
 0x596   :  { %v712_v36 = vadd.f32 1.0, %v979_v13 }
 0x598   :  { %v714_v37 = vmul.f32 0.5, %v712_v36 }
 0x59a   :  { %v716_v38 = vmul.f32 %v714_v37, %v697_v26 }
 0x59c   :  { %v717_v39 = vpack.c.bf16 %v716_v38, %v715_v12 }
 0x59e   :  { %897 = vmatmul.msk.bf16.vlgmr.msrb.gmra.mxu3 %vm741_vm13, %v717_v39 }
 0x621   :  { %v754_v42 = vpop.f32.mrf.mxu3 }
 0x622   :  { %v755_v43 = vadd.f32 %v754_v42, %v718_v41 }
 0x624   :  { %v759_v44 = vadd.f32 %v755_v43, %v666_v1 }
 0x626   :  { %v761_v45 = vsel %vm100_vm3, %v759_v44, 0.0  ;;  %v769_v46 = vmul.f32 %v759_v44, %v759_v44 }
 0x627   :  { %762 = vadd.xlane.f32.xlu0 %v761_v45 }
 0x628   :  { %v771_v49 = vsel %vm100_vm3, %v769_v46, 0.0 }
 0x629   :  { %v756_v50 = vpop.f32.mrf.mxu3  ;;  %772 = vadd.xlane.f32.xlu2 %v771_v49 }
 0x62a   :  { %v757_v51 = vadd.f32 %v756_v50, %v718_v41 }
 0x62c   :  { %v760_v52 = vadd.f32 %v757_v51, %v667_v6 }
 0x62e   :  { %v764_v53 = vsel %vm100_vm3, %v760_v52, 0.0  ;;  %v770_v40 = vmul.f32 %v760_v52, %v760_v52 }
 0x62f   :  { %765 = vadd.xlane.f32.xlu1 %v764_v53 }
 0x630   :  { %v774_v59 = vsel %vm100_vm3, %v770_v40, 0.0 }
 0x631   :  { %775 = vadd.xlane.f32.xlu0 %v774_v59 }
 0x69a   :  { %v763_v54 = vpop.xlane.xlu0 %762 }
 0x69b   :  { %v767_v48 = vmul.f32 %v763_v54, %v1429_v62 }
 0x69c   :  { %v773_v55 = vpop.xlane.xlu2 %772 }
 0x69d   :  { %v779_v56 = vmul.f32 %v767_v48, %v767_v48  ;;  %v777_v33 = vmul.f32 %v773_v55, %v1429_v62  ;;  %v783_v9 = vsub.f32 %v759_v44, %v767_v48 }
 0x69f   :  { %v781_v63 = vsub.f32 %v777_v33, %v779_v56 }
 0x6a1   :  { %v785_v2 = vadd.f32 1e-05, %v781_v63 }
 0x6a2   :  { %v766_v24 = vpop.xlane.xlu1 %765 }
 0x6a3   :  { %980 = vrsqrt.f32 %v785_v2  ;;  %v768_v25 = vmul.f32 %v766_v24, %v1429_v62  ;;  %vm793_vm15 = vweird.f32 %v785_v2 }
 0x6a4   :  { %v776_v57 = vpop.xlane.xlu0 %775 }
 0x6a5   :  { %v780_v18 = vmul.f32 %v768_v25, %v768_v25  ;;  %v778_v58 = vmul.f32 %v776_v57, %v1429_v62  ;;  %v812_v62 = vperm.slane %v1219_v15, 7  ;;  %v784_v61 = vsub.f32 %v760_v52, %v768_v25 }
 0x6a7   :  { %v782_v0 = vsub.f32 %v778_v58, %v780_v18 }
 0x6a9   :  { %v981_v47 = vpop.eup %980  ;;  %v786_v60 = vadd.f32 1e-05, %v782_v0 }
 0x6aa   :  { %v788_v3 = vmul.f32 %v981_v47, %v785_v2  ;;  %vm794_vm14 = vweird.f32 %v981_v47 }
 0x6ab   :  { %982 = vrsqrt.f32 %v786_v60  ;;  %vm795_vm0 = vmor %vm793_vm15, %vm794_vm14  ;;  %vm803_vm2 = vweird.f32 %v786_v60 }
 0x6ac   :  { %v789_v4 = vmul.f32 %v981_v47, %v788_v3 }
 0x6ae   :  { %v790_v5 = vmul.f32 0.5, %v789_v4 }
 0x6b0   :  { %v791_v1 = vsub.f32 1.5, %v790_v5 }
 0x6b1   :  { %v983_v6 = vpop.eup %982 }
 0x6b2   :  { %v792_v7 = vmul.f32 %v981_v47, %v791_v1  ;;  %v798_v8 = vmul.f32 %v983_v6, %v786_v60  ;;  %vm804_vm1 = vweird.f32 %v983_v6 }
 0x6b3   :  { %vm805_vm4 = vmor %vm803_vm2, %vm804_vm1 }
 0x6b4   :  { %v796_v11 = vsel %vm795_vm0, %v981_v47, %v792_v7  ;;  %v799_v14 = vmul.f32 %v983_v6, %v798_v8 }
 0x6b5   :  { %v807_v16 = vmul.f32 %v796_v11, %v783_v9 }
 0x6b6   :  { %v800_v17 = vmul.f32 0.5, %v799_v14 }
 0x6b7   :  { %v810_v19 = vmul.f32 %v809_v10, %v807_v16 }
 0x6b8   :  { %v801_v20 = vsub.f32 1.5, %v800_v17 }
 0x6b9   :  { %v813_v21 = vadd.f32 %v812_v62, %v810_v19 }
 0x6ba   :  { %v802_v23 = vmul.f32 %v983_v6, %v801_v20 }
 0x6bb   :  { %815 = vst.msk [vmem:[#allocation5] sm:$0xff] %vm100_vm3, %v813_v21 }
 0x6bc   :  { %v806_v26 = vsel %vm805_vm4, %v983_v6, %v802_v23 }
 0x6bd   :  { %v808_v27 = vmul.f32 %v806_v26, %v784_v61 }
 0x6bf   :  { %v811_v15 = vmul.f32 %v809_v10, %v808_v27 }
 0x6c1   :  { %v814_v28 = vadd.f32 %v812_v62, %v811_v15 }
 0x6c3   :  { %816 = vst.msk [vmem:[#allocation5 + $0x8] sm:$0xff] %vm100_vm3, %v814_v28 }
 0x6c4   :  { %829 = dma.vmem_to_hbm [thread:$0]  %s822_s6, 256, %s824_s9, [#allocation4], %s1044_s10, %s1044_s10, %s1045_s11  }
 0x6c5   :  { %1034 = dma.done.wait [#allocation4], 256  }
 0x6c6   :  { %1035 = vsyncadd [#allocation4], 4294967040 }
 0x6c7   :  { %834 = vsyncpa [#allocation3], 1 }
 0x6c8   :  { %835 = vsyncpa [#allocation4], 1 }

</bundles_post_ra>
